<compile_context>
chip_gen: v7x
topology: tpu7x:2x2x1
jax: 0.10.0
libtpu: 0.0.40
codegen_flags: <defaults>
</compile_context>

<pallas_src>
from functools import partial

import jax
import jax.numpy as jnp
from jax import lax
from jax.experimental import pallas as pl
from jax.experimental.pallas import tpu as pltpu

EPS = 1e-5  # PyTorch BatchNorm1d default


def basic_block_kernel(x_ref, wt_ref, b_ref, g_ref, be_ref, o_ref):
    # x_ref:  (B, S) f32  -- channel c's slab (column block of native (B, C*S))
    # wt_ref: (S, S) f32  -- W.T, VMEM-resident across all grid steps
    # b_ref:  (1, S) f32  -- Linear bias (lane-dense)
    # g_ref:  (C,)   f32  -- BN gamma, SMEM scalars
    # be_ref: (C,)   f32  -- BN beta,  SMEM scalars
    # o_ref:  (B, S) out dtype
    c = pl.program_id(0)

    # Linear: y = x @ W^T + b  (f32 operands, f32 accumulation on the MXU)
    y = jnp.dot(x_ref[...], wt_ref[...], preferred_element_type=jnp.float32)
    y = y + b_ref[...]                                      # broadcast (1, S)

    # BatchNorm1d (training mode): biased stats over this channel's (B, S).
    B, S = y.shape
    inv_n = 1.0 / float(B * S)
    s1 = jnp.sum(y, axis=0, keepdims=True)                  # (1, S) sublane reduce
    mean = jnp.sum(s1, axis=1, keepdims=True) * inv_n       # (1, 1) lane reduce
    d = y - mean                                            # centered (two-pass var)
    s2 = jnp.sum(d * d, axis=0, keepdims=True)
    var = jnp.sum(s2, axis=1, keepdims=True) * inv_n        # (1, 1)

    scale = g_ref[c] * lax.rsqrt(var + EPS)                 # (1, 1), EUP rsqrt
    # Fused affine + ReLU epilogue in f32 (one FMA + max per element).
    o_ref[...] = jnp.maximum(d * scale + be_ref[c], 0.0).astype(o_ref.dtype)


@partial(jax.jit, static_argnames=("out_dtype",))
def basic_block(x, weight, bias, gamma, beta, out_dtype=None):
    """x: (B, C, S) f32; weight/bias as nn.Linear(S, S) (y = x @ W^T + b)."""
    B, C, S = x.shape
    out_dtype = x.dtype if out_dtype is None else out_dtype

    # Free layout plumbing (no HBM copies): collapse (C, S) -> C*S columns so
    # each channel is a contiguous column block; tiny one-time W.T.
    x2 = x.reshape(B, C * S)
    wt = weight.T
    b2 = bias.reshape(1, S).astype(jnp.float32)

    # VMEM budget from the actual double-buffered footprint (v7x: 64 MiB).
    xb = x.dtype.itemsize
    ob = jnp.dtype(out_dtype).itemsize
    blk = B * S * (xb + ob)                          # one input + one output block
    res = S * S * weight.dtype.itemsize + S * 4      # resident W.T + bias
    need = 2 * blk + 2 * res + 4 * B * S * 4         # dbl-buffer + f32 temporaries
    vmem_limit = int(min(max(2 * need, 8 * 1024 * 1024), 40 * 1024 * 1024))

    out2 = pl.pallas_call(
        basic_block_kernel,
        out_shape=jax.ShapeDtypeStruct((B, C * S), out_dtype),
        grid=(C,),
        in_specs=[
            pl.BlockSpec((B, S), lambda c: (0, c)),              # channel c slab
            pl.BlockSpec((S, S), lambda c: (0, 0)),              # W.T: loaded once
            pl.BlockSpec((1, S), lambda c: (0, 0)),              # bias: loaded once
            pl.BlockSpec(memory_space=pltpu.MemorySpace.SMEM),   # gamma
            pl.BlockSpec(memory_space=pltpu.MemorySpace.SMEM),   # beta
        ],
        out_specs=pl.BlockSpec((B, S), lambda c: (0, c)),
        compiler_params=pltpu.CompilerParams(
            dimension_semantics=("parallel",),   # channels independent -> megacore
            vmem_limit_bytes=vmem_limit,
        ),
    )(x2, wt, b2, gamma.astype(jnp.float32), beta.astype(jnp.float32))

    return out2.reshape(B, C, S)                 # free metadata reshape back


def reference(x, weight, bias, gamma, beta):
    """Pure-JAX reference mirroring PyTorch semantics (training-mode BN)."""
    y = jnp.einsum("bcs,os->bco", x, weight,
                   precision=lax.Precision.HIGHEST) + bias
    mean = jnp.mean(y, axis=(0, 2), keepdims=True)
    var = jnp.mean((y - mean) ** 2, axis=(0, 2), keepdims=True)
    y_hat = (y - mean) / jnp.sqrt(var + EPS)
    out = y_hat * gamma.reshape(1, -1, 1) + beta.reshape(1, -1, 1)
    return jnp.maximum(out, 0.0)


if __name__ == "__main__":
    # Small demo shapes; S kept lane-aligned (multiple of 128).
    B, C, S = 16, 4, 128

    key = jax.random.PRNGKey(0)
    kx, kw, kb, kg, kbe = jax.random.split(key, 5)

    x = jax.random.normal(kx, (B, C, S), dtype=jnp.float32)

    # nn.Linear(size, size) default init: U(-1/sqrt(size), 1/sqrt(size))
    bound = 1.0 / jnp.sqrt(jnp.float32(S))
    weight = jax.random.uniform(kw, (S, S), jnp.float32, -bound, bound)
    bias = jax.random.uniform(kb, (S,), jnp.float32, -bound, bound)

    # Non-trivial BN affine params to exercise the epilogue.
    gamma = 1.0 + 0.1 * jax.random.normal(kg, (C,), jnp.float32)
    beta = 0.1 * jax.random.normal(kbe, (C,), jnp.float32)

    out = jax.block_until_ready(basic_block(x, weight, bias, gamma, beta))
    assert out.shape == (B, C, S) and out.dtype == x.dtype

    ref = reference(x, weight, bias, gamma, beta)
    max_err = float(jnp.max(jnp.abs(out - ref)))
    assert jnp.allclose(out, ref, atol=1e-2, rtol=1e-2), f"mismatch: {max_err}"

    print("KERNEL_OK")
</pallas_src>

<mosaic_0001>
module attributes {stable_mosaic.version = 11 : i64} {
  func.func @basic_block_kernel(%arg0: i32, %arg1: memref<16x128xf32, #tpu.memory_space<vmem>>, %arg2: memref<128x128xf32, #tpu.memory_space<vmem>>, %arg3: memref<1x128xf32, #tpu.memory_space<vmem>>, %arg4: memref<4xf32, #tpu.memory_space<smem>>, %arg5: memref<4xf32, #tpu.memory_space<smem>>, %arg6: memref<16x128xf32, #tpu.memory_space<vmem>>) attributes {dimension_semantics = [#tpu.dimension_semantics<parallel>], iteration_bounds = array<i64: 4>, scalar_prefetch = 0 : i64, scratch_operands = 0 : i64, tpu.core_type = #tpu.core_type<tc>, window_params = [{transform_indices = @transform_0, window_bounds = array<i64: 16, 128>}, {pipeline_mode = #tpu.pipeline_mode<synchronous>, transform_indices = @transform_1, window_bounds = array<i64: 128, 128>}, {pipeline_mode = #tpu.pipeline_mode<synchronous>, transform_indices = @transform_2, window_bounds = array<i64: 1, 128>}, {transform_indices = @transform_3, window_bounds = array<i64: 4>}, {transform_indices = @transform_4, window_bounds = array<i64: 4>}, {transform_indices = @transform_5, window_bounds = array<i64: 16, 128>}]} {
    %c0 = arith.constant 0 : index
    %c0_0 = arith.constant 0 : index
    %0 = vector.load %arg1[%c0, %c0_0] : memref<16x128xf32, #tpu.memory_space<vmem>>, vector<16x128xf32>
    %c0_1 = arith.constant 0 : index
    %c0_2 = arith.constant 0 : index
    %1 = vector.load %arg2[%c0_1, %c0_2] : memref<128x128xf32, #tpu.memory_space<vmem>>, vector<128x128xf32>
    %cst = arith.constant dense<0.000000e+00> : vector<16x128xf32>
    %2 = tpu.matmul %0, %1, %cst {dimension_numbers = #tpu.dot_dimension_numbers<[1], [0], [0], [1], [0, 0, 1, 1], [], []>} : vector<16x128xf32>, vector<128x128xf32>, vector<16x128xf32> -> vector<16x128xf32>
    %c0_3 = arith.constant 0 : index
    %c0_4 = arith.constant 0 : index
    %3 = vector.load %arg3[%c0_3, %c0_4] : memref<1x128xf32, #tpu.memory_space<vmem>>, vector<1x128xf32>
    %4 = vector.broadcast %3 : vector<1x128xf32> to vector<16x128xf32>
    %5 = arith.addf %2, %4 : vector<16x128xf32>
    %cst_5 = arith.constant dense<0.000000e+00> : vector<128xf32>
    %6 = vector.multi_reduction <add>, %5, %cst_5 [0] : vector<16x128xf32> to vector<128xf32>
    %7 = vector.shape_cast %6 : vector<128xf32> to vector<1x128xf32>
    %cst_6 = arith.constant dense<0.000000e+00> : vector<1xf32>
    %8 = vector.multi_reduction <add>, %7, %cst_6 [1] : vector<1x128xf32> to vector<1xf32>
    %9 = vector.shape_cast %8 : vector<1xf32> to vector<1x1xf32>
    %cst_7 = arith.constant 4.8828125E-4 : f32
    %10 = vector.broadcast %cst_7 : f32 to vector<1x1xf32>
    %11 = arith.mulf %9, %10 : vector<1x1xf32>
    %12 = vector.broadcast %11 : vector<1x1xf32> to vector<16x128xf32>
    %13 = arith.subf %5, %12 : vector<16x128xf32>
    %14 = arith.mulf %13, %13 : vector<16x128xf32>
    %cst_8 = arith.constant dense<0.000000e+00> : vector<128xf32>
    %15 = vector.multi_reduction <add>, %14, %cst_8 [0] : vector<16x128xf32> to vector<128xf32>
    %16 = vector.shape_cast %15 : vector<128xf32> to vector<1x128xf32>
    %cst_9 = arith.constant dense<0.000000e+00> : vector<1xf32>
    %17 = vector.multi_reduction <add>, %16, %cst_9 [1] : vector<1x128xf32> to vector<1xf32>
    %18 = vector.shape_cast %17 : vector<1xf32> to vector<1x1xf32>
    %cst_10 = arith.constant 4.8828125E-4 : f32
    %19 = vector.broadcast %cst_10 : f32 to vector<1x1xf32>
    %20 = arith.mulf %18, %19 : vector<1x1xf32>
    %21 = arith.index_cast %arg0 : i32 to index
    %22 = memref.load %arg4[%21] : memref<4xf32, #tpu.memory_space<smem>>
    %cst_11 = arith.constant 9.99999974E-6 : f32
    %23 = vector.broadcast %cst_11 : f32 to vector<1x1xf32>
    %24 = arith.addf %20, %23 : vector<1x1xf32>
    %25 = math.rsqrt %24 : vector<1x1xf32>
    %26 = vector.broadcast %22 : f32 to vector<1x1xf32>
    %27 = arith.mulf %26, %25 : vector<1x1xf32>
    %28 = vector.broadcast %27 : vector<1x1xf32> to vector<16x128xf32>
    %29 = arith.mulf %13, %28 : vector<16x128xf32>
    %30 = arith.index_cast %arg0 : i32 to index
    %31 = memref.load %arg5[%30] : memref<4xf32, #tpu.memory_space<smem>>
    %32 = vector.broadcast %31 : f32 to vector<16x128xf32>
    %33 = arith.addf %29, %32 : vector<16x128xf32>
    %cst_12 = arith.constant 0.000000e+00 : f32
    %34 = vector.broadcast %cst_12 : f32 to vector<16x128xf32>
    %35 = arith.maximumf %33, %34 : vector<16x128xf32>
    %c0_13 = arith.constant 0 : index
    %c0_14 = arith.constant 0 : index
    %36 = vector.load %arg6[%c0_13, %c0_14] : memref<16x128xf32, #tpu.memory_space<vmem>>, vector<16x128xf32>
    tpu.vector_store %arg6[%c0_13, %c0_14], %35 {strides = array<i32>} : memref<16x128xf32, #tpu.memory_space<vmem>>, vector<16x128xf32>,
    return
  }
  func.func @transform_0(%arg0: i32) -> (i32, i32) {
    %c0_i32 = arith.constant 0 : i32
    %c0_i32_0 = arith.constant 0 : i32
    return %c0_i32, %arg0 : i32, i32
  }
  func.func @transform_1(%arg0: i32) -> (i32, i32) {
    %c0_i32 = arith.constant 0 : i32
    %c0_i32_0 = arith.constant 0 : i32
    %c0_i32_1 = arith.constant 0 : i32
    return %c0_i32, %c0_i32_0 : i32, i32
  }
  func.func @transform_2(%arg0: i32) -> (i32, i32) {
    %c0_i32 = arith.constant 0 : i32
    %c0_i32_0 = arith.constant 0 : i32
    %c0_i32_1 = arith.constant 0 : i32
    return %c0_i32, %c0_i32_0 : i32, i32
  }
  func.func @transform_3(%arg0: i32) -> i32 {
    %c0_i32 = arith.constant 0 : i32
    %c0_i32_0 = arith.constant 0 : i32
    return %c0_i32 : i32
  }
  func.func @transform_4(%arg0: i32) -> i32 {
    %c0_i32 = arith.constant 0 : i32
    %c0_i32_0 = arith.constant 0 : i32
    return %c0_i32 : i32
  }
  func.func @transform_5(%arg0: i32) -> (i32, i32) {
    %c0_i32 = arith.constant 0 : i32
    %c0_i32_0 = arith.constant 0 : i32
    return %c0_i32, %arg0 : i32, i32
  }
}

</mosaic_0001>

<bundles_post_ra>
// kernel: basic_block.1
= control target key start
LH: loop header
LB: loop body
LE: loop exit
PB: predicated region body
PF: predicated region fallthrough
CT: control target
= control target key end

     0   :  { %10 = vsyncpa [#allocation4], 0  ;;  %s952_s0 = inlined_call_operand.vmem [shape: f32[16,512], index: 0, kind: input, shape index: {}]   ;;  %s953_s1 = inlined_call_operand.vmem [shape: f32[128,128], index: 1, kind: input, shape index: {}]   ;;  %s954_s2 = inlined_call_operand.vmem [shape: f32[1,128], index: 2, kind: input, shape index: {}]   ;;  %s955_s3 = inlined_call_operand.vmem [shape: f32[4], index: 3, kind: input, shape index: {}]   ;;  %s956_s4 = inlined_call_operand.vmem [shape: f32[4], index: 4, kind: input, shape index: {}]   ;;  %s957_s5 = inlined_call_operand.vmem [shape: f32[16,512], index: 5, kind: output, shape index: {}]  }
   0x1   :  { %11 = vsyncpa [#allocation6], 0  ;;  %s790_s18 = smov 0   ;;  %s792_s19 = smov 0  }
   0x2   :  { %s794_s20 = smov 0  }
   0x3 LB: > { %s806_s21 = sadd.s32 4294967295, %s756_s20   ;;  %s809_s22 = sadd.s32 1, %s756_s20   ;;  %s756_s20 = sphi %s794_s20, %s973_s20   ;;  %s752_s19 = sphi %s792_s19, %s972_s19   ;;  %s748_s18 = sphi %s790_s18, %s971_s18  }
   0x4   : > { %s21_s23 = ssub.s32 %s756_s20, %s809_s22  ;;  %s24_s24 = sadd.s32 1, %s752_s19 }
   0x5   : > { %p22_p0 = scmp.eq.s32.totalorder %s21_s23, 0  ;;  %p31_p1 = scmp.ne.s32.totalorder %s752_s19, %s748_s18 }
   0x6   : > { %p32_p2 = scmp.eq.s32.totalorder %s756_s20, 0  ;;  %p145_p3 = scmp.eq.s32.totalorder %s806_s21, 3 }
   0x7   : > { %s819_s25 = scalar_select %p22_p0, %s752_s19, %s24_s24  }
   0x8   : > { %p821_p4 = por %p32_p2, %p31_p1  ;;  %p825_p5 = por %p145_p3, %p31_p1 }
   0x9   : > { %p548_p6 = scmp.ge.s32.totalorder %s756_s20, 1  ;;  %p158_p7 = scmp.lt.s32.totalorder %s756_s20, 5 }
   0xa   : > { %s960_s26 = scalar_select %p821_p4, 1, 0 }
   0xb   : > { %s961_s27 = scalar_select %p825_p5, 1, 0 }
   0xc   : > { %p958_p8 = scmp.eq.s32.totalorder %s806_s21, 0  ;;  %p832_p9 = pnand %p548_p6, %p158_p7 }
   0xd   : > { %s177_s6 = sshll.u32 %s955_s3, 4  ;;  %s188_s9 = sshll.u32 %s956_s4, 4  ;;  %s178_s6 = int_to_ptr.vmem [resolvable:$true] %s177_s6  ;;  %s189_s9 = int_to_ptr.vmem [resolvable:$true] %s188_s9 }
   0xe   : > { %s962_s28 = scalar_select %p832_p9, 1, 0 }
   0xf   : > { %p657_p10 = pneg %p832_p9  ;;  %s696_s11 = scalar_lea.vmem %s178_s6, 16 }
  0x10   : > { %p697_p12 = scmp.ne.s32.totalorder %s178_s6, %s696_s11  ;;  %p704_p2 = scmp.lt.s32.totalorder %s178_s6, %s178_s6 }
  0x11   : > { %p846_p11 = pnand %p958_p8, %p657_p10  ;;  %p705_p3 = scmp.lt.s32.totalorder %s696_s11, %s696_s11 }
  0x13   : > { %p698_p13 = pneg %p846_p11  ;;  %p706_p6 = por %p705_p3, %p704_p2 }
  0x15   : > { %p699_p0 = pnand %p698_p13, %p697_p12 }
  0x17   : > { %p700_p1 = pneg %p699_p0 }
  0x19   : > { %p707_p7 = pnand %p706_p6, %p700_p1 }
  0x1b   : > { %710 = shalt.err (!%p707_p7)
}
  0x1c   : > { %s758_s12 = smov [#allocation3]   ;;  %s711_s13 = scalar_lea.vmem %s189_s9, 16 }
  0x1d   : > { %660 = dma.vmem_to_smem (!%p846_p11), %s178_s6, 16, %s758_s12, [#allocation4]  }
  0x1e   : > { %p712_p10 = scmp.ne.s32.totalorder %s189_s9, %s711_s13  ;;  %p719_p9 = scmp.lt.s32.totalorder %s189_s9, %s189_s9 }
  0x1f   : > { %p720_p4 = scmp.lt.s32.totalorder %s711_s13, %s711_s13 }
  0x20   : > { %p714_p8 = pnand %p712_p10, %p698_p13 }
  0x21   : > { %p721_p12 = por %p720_p4, %p719_p9 }
  0x22   : > { %p715_p5 = pneg %p714_p8 }
  0x24   : > { %p722_p0 = pnand %p721_p12, %p715_p5 }
  0x26   : > { %725 = shalt.err (!%p722_p0)
}
  0x27   : > { %s759_s14 = smov [#allocation5]   ;;  %p551_p1 = scmp.ge.s32.totalorder %s756_s20, 4 }
  0x28   : > { %663 = dma.vmem_to_smem (!%p846_p11), %s189_s9, 16, %s759_s14, [#allocation6]  }
  0x29   : > { %195 = sbr.rel (%p551_p1) target bundleno = 55 (0x37), region = 32  ;;  %p964_p2 = scmp.ne.s32.totalorder (!%p551_p1), %s960_s26, 0 }
  0x30   : > { %198 = sbr.rel (!%p964_p2) target bundleno = 55 (0x37), region = 36  ;;  %s200_s15 = sand.u32 (%p964_p2), 1, %s752_s19  }
  0x31   : > { %s553_s16 = sshll.u32 (%p964_p2), %s756_s20, 3  ;;  %s552_s17 = sshll.u32 (%p964_p2), %s200_s15, 4 }
  0x32   : > { %s204_s29 = scalar_lea.vmem (%p964_p2), %s952_s0, %s553_s16  ;;  %s202_s30 = scalar_lea.vmem (%p964_p2), [#allocation2], %s552_s17 }
  0x33   : > { %v234_v0 = vld [vmem:[%s204_s29] sm:$0xff] (%p964_p2) }
  0x34   : > { %v236_v1 = vld [vmem:[%s204_s29 + $0x20] sm:$0xff] (%p964_p2)  ;;  %235 = vst [vmem:[%s202_s30] sm:$0xff] (%p964_p2), %v234_v0 }
  0x35   : > { %237 = vst [vmem:[%s202_s30 + $0x8] sm:$0xff] (%p964_p2), %v236_v1 }
  0x37 PF: > { %p965_p4 = scmp.ne.s32.totalorder %s962_s28, 0 }
  0x38   : > { %s249_s26 = sand.u32 (!%p965_p4), 1, %s748_s18   ;;  %p966_p5 = scmp.eq.s32.totalorder (!%p965_p4), %s806_s21, 0 }
  0x39   : > { %246 = sbr.rel (%p965_p4) target bundleno = 671 (0x29f), region = 74  ;;  %s867_s6 = sshll.u32 (!%p965_p4), %s249_s26, 4 }
  0x3a   : > { %s251_s20 = scalar_lea.vmem (!%p965_p4), [#allocation2], %s867_s6 }
  0x40   : > { %739 = dma.done.wait (%p966_p5), [#allocation4], 16   ;;  %p967_p8 = pmov %p966_p5 }
  0x41   : > { %p968_p9 = pmov %p966_p5 }
  0x42   : > { %741 = vsyncadd (%p967_p8), [#allocation4], 4294967280 }
  0x43   : > { %743 = dma.done.wait (%p968_p9), [#allocation6], 16   ;;  %p969_p11 = pmov %p966_p5 }
  0x45   : > { %745 = vsyncadd (%p969_p11), [#allocation6], 4294967280 }
  0x46   : > { %263 = sfence }
  0x47   : > { %v286_v2 = vld [vmem:[%s953_s1] sm:$0xff]  ;;  %v287_v3 = vld [vmem:[%s953_s1 + $0x8] sm:$0xff]  ;;  %v288_v4 = vld [vmem:[%s953_s1 + $0x10] sm:$0xff]  ;;  %s415_s30 = sld [smem:[#allocation5 + %s806_s21]]  ;;  %s283_s26 = scalar_lea.vmem [#allocation7], %s867_s6 }
  0x48   : > { %v617_v5 = vpack.c.bf16 %v287_v3, %v286_v2  ;;  %v289_v6 = vld [vmem:[%s953_s1 + $0x18] sm:$0xff]  ;;  %v290_v8 = vld [vmem:[%s953_s1 + $0x20] sm:$0xff]  ;;  %v291_v9 = vld [vmem:[%s953_s1 + $0x28] sm:$0xff]  ;;  %p970_p13 = scmp.ne.s32.totalorder %s961_s27, 0 }
  0x49   : > { %v621_v7 = vpack.c.bf16 %v289_v6, %v288_v4  ;;  %v625_v10 = vpack.c.bf16 %v291_v9, %v290_v8  ;;  %v284_v11 = vld [vmem:[%s251_s20] sm:$0xff]  ;;  %v293_v13 = vld [vmem:[%s953_s1 + $0x38] sm:$0xff]  ;;  %v295_v16 = vld [vmem:[%s953_s1 + $0x48] sm:$0xff]  ;;  %s561_s28 = sshll.u32 (%p970_p13), %s806_s21, 3 }
  0x4a   : > { %618 = vmatprep.subr.bf16.mxu0 %v617_v5  ;;  %v292_v12 = vld [vmem:[%s953_s1 + $0x30] sm:$0xff]  ;;  %614 = vmatprep.mubr.f32.mxu0 %v284_v11  ;;  %v294_v15 = vld [vmem:[%s953_s1 + $0x40] sm:$0xff]  ;;  %v297_v19 = vld [vmem:[%s953_s1 + $0x58] sm:$0xff]  ;;  %s431_s8 = scalar_lea.vmem (%p970_p13), %s957_s5, %s561_s28 }
  0x4b   : > { %620 = vmatpush3.bf16.msra.mxu0 %v617_v5  ;;  %v629_v14 = vpack.c.bf16 %v293_v13, %v292_v12  ;;  %v633_v17 = vpack.c.bf16 %v295_v16, %v294_v15  ;;  %v296_v18 = vld [vmem:[%s953_s1 + $0x50] sm:$0xff]  ;;  %v298_v21 = vld [vmem:[%s953_s1 + $0x60] sm:$0xff]  ;;  %v299_v22 = vld [vmem:[%s953_s1 + $0x68] sm:$0xff] }
  0x4c   : > { %622 = vmatprep.subr.bf16.mxu0 %v621_v7  ;;  %v637_v20 = vpack.c.bf16 %v297_v19, %v296_v18  ;;  %v641_v23 = vpack.c.bf16 %v299_v22, %v298_v21  ;;  %v300_v24 = vld [vmem:[%s953_s1 + $0x70] sm:$0xff]  ;;  %v301_v25 = vld [vmem:[%s953_s1 + $0x78] sm:$0xff]  ;;  %v559_v28 = vld [vmem:[%s954_s2] ss:$0 sm:$0xff] }
  0x4d   : > { %v645_v26 = vpack.c.bf16 %v301_v25, %v300_v24  ;;  %v285_v27 = vld [vmem:[%s251_s20 + $0x8] sm:$0xff]  ;;  %s408_s20 = sld [smem:[#allocation3 + %s806_s21]]  ;;  %v416_v59 = vstv %s415_s30 }
  0x4f   : > { %624 = vmatpush3.bf16.msra.mxu0 %v621_v7 }
  0x50   : > { %626 = vmatprep.subr.bf16.mxu0 %v625_v10 }
  0x53   : > { %628 = vmatpush3.bf16.msra.mxu0 %v625_v10  ;;  %v411_v56 = vstv %s408_s20 }
  0x54   : > { %630 = vmatprep.subr.bf16.mxu0 %v629_v14 }
  0x57   : > { %632 = vmatpush3.bf16.msra.mxu0 %v629_v14 }
  0x58   : > { %634 = vmatprep.subr.bf16.mxu0 %v633_v17 }
  0x5b   : > { %636 = vmatpush3.bf16.msra.mxu0 %v633_v17 }
  0x5c   : > { %638 = vmatprep.subr.bf16.mxu0 %v637_v20 }
  0x5f   : > { %640 = vmatpush3.bf16.msra.mxu0 %v637_v20 }
  0x60   : > { %642 = vmatprep.subr.bf16.mxu0 %v641_v23 }
  0x63   : > { %644 = vmatpush3.bf16.msra.mxu0 %v641_v23 }
  0x64   : > { %646 = vmatprep.subr.bf16.mxu0 %v645_v26 }
  0x67   : > { %648 = vmatpush3.bf16.msra.mxu0 %v645_v26 }
  0x6a   : > { %615 = vmatmul.mubr.f32.vlgmr.msra.gmra.mrb[0].mxu0 %v285_v27 }
 0x13d   : > { %v616_v29 = vpop.f32.mrb[0].mxu0 }
 0x13e   : > { %v381_v30 = vadd.f32 %v616_v29, %v559_v28  ;;  %v375_v31 = vpop.f32.mrb[1].mxu0 }
 0x13f   : > { %v376_v32 = vadd.f32 %v559_v28, %v375_v31 }
 0x141   : > { %v384_v33 = vadd.f32 %v381_v30, %v376_v32 }
 0x143   : > { %v385_v34 = vrot.slane %v384_v33, 4 }
 0x145   : > { %v386_v35 = vadd.f32 %v385_v34, %v384_v33 }
 0x147   : > { %v387_v36 = vrot.slane %v386_v35, 2 }
 0x149   : > { %v388_v37 = vadd.f32 %v387_v36, %v386_v35 }
 0x14b   : > { %v389_v38 = vrot.slane %v388_v37, 1 }
 0x14d   : > { %v390_v39 = vadd.f32 %v389_v38, %v388_v37 }
 0x14f   : > { %391 = vadd.xlane.f32.xlu0 %v390_v39 }
 0x1dc   : > { %v392_v40 = vpop.xlane.xlu0 %391 }
 0x1dd   : > { %v393_v41 = vmul.f32 0.00048828125, %v392_v40 }
 0x1df   : > { %v394_v42 = vsub.f32 %v376_v32, %v393_v41  ;;  %v395_v43 = vsub.f32 %v381_v30, %v393_v41 }
 0x1e1   : > { %v396_v44 = vmul.f32 %v394_v42, %v394_v42  ;;  %v397_v45 = vmul.f32 %v395_v43, %v395_v43 }
 0x1e3   : > { %v398_v46 = vadd.f32 %v397_v45, %v396_v44 }
 0x1e5   : > { %v399_v47 = vrot.slane %v398_v46, 4 }
 0x1e7   : > { %v400_v48 = vadd.f32 %v399_v47, %v398_v46 }
 0x1e9   : > { %v401_v49 = vrot.slane %v400_v48, 2 }
 0x1eb   : > { %v402_v50 = vadd.f32 %v401_v49, %v400_v48 }
 0x1ed   : > { %v403_v51 = vrot.slane %v402_v50, 1 }
 0x1ef   : > { %v404_v52 = vadd.f32 %v403_v51, %v402_v50 }
 0x1f1   : > { %405 = vadd.xlane.f32.xlu0 %v404_v52 }
 0x27e   : > { %v406_v53 = vpop.xlane.xlu0 %405 }
 0x27f   : > { %v407_v54 = vmul.f32 0.00048828125, %v406_v53 }
 0x281   : > { %v409_v55 = vadd.f32 1e-05, %v407_v54 }
 0x283   : > { %694 = vrsqrt.f32 %v409_v55 }
 0x28d   : > { %v695_v57 = vpop.eup %694 }
 0x28e   : > { %v412_v58 = vmul.f32 %v695_v57, %v411_v56 }
 0x290   : > { %v413_v60 = vmul.f32 %v412_v58, %v394_v42  ;;  %v414_v61 = vmul.f32 %v412_v58, %v395_v43  ;;  %429 = sbr.rel (!%p970_p13) target bundleno = 671 (0x29f), region = 90 }
 0x292   : > { %v417_v62 = vadd.f32 %v416_v59, %v413_v60  ;;  %v418_v63 = vadd.f32 %v416_v59, %v414_v61 }
 0x294   : > { %v419_v0 = vmax.f32 %v417_v62, 0.0  ;;  %v420_v1 = vmax.f32 %v418_v63, 0.0 }
 0x296   : > { %421 = vst [vmem:[%s283_s26] sm:$0xff] %v419_v0  ;;  %422 = vst [vmem:[%s283_s26 + $0x8] sm:$0xff] %v420_v1 }
 0x29d   : > { %v461_v2 = vld [vmem:[%s283_s26] sm:$0xff]  ;;  %v463_v3 = vld [vmem:[%s283_s26 + $0x8] sm:$0xff] }
 0x29e   : > { %462 = vst [vmem:[%s431_s8] sm:$0xff] %v461_v2  ;;  %464 = vst [vmem:[%s431_s8 + $0x20] sm:$0xff] %v463_v3 }
 0x29f PF: > { %p14_p3 = scmp.ge.s32.totalorder %s809_s22, 6   ;;  %s971_s18 = smov %s752_s19 }
 0x2a0   : > { %s972_s19 = smov %s819_s25  ;;  %s973_s20 = smov %s809_s22 }
 0x2a1   :  { %16 = sbr.rel (!%p14_p3) target bundleno = 3 (0x3), region = 160 }
 0x2a8   :  { %480 = vsyncpa [#allocation4], 1 }
 0x2a9   :  { %482 = vsyncpa [#allocation4 + $0x1], 1 }
 0x2aa   :  { %483 = vsyncpa [#allocation6], 1 }

</bundles_post_ra>
